<compile_context>
chip_gen: v6e
topology: v6e:2x2x1
jax: 0.10.0
libtpu: 0.0.40
codegen_flags: <defaults>
</compile_context>

<pallas_src>
import functools
import math

import jax
import jax.numpy as jnp
import numpy as np
from jax import lax
from jax.experimental import pallas as pl
from jax.experimental.pallas import tpu as pltpu

_LANE = 128


def _sliding_window_sum_axis1(y, window):
    """Sliding-window sum of width `window` along axis 1 of a 3-D f32 value.

    Doubling scheme: ~2*log2(window) vector adds instead of `window` adds.
    y: (TB, M, TC) -> (TB, M - window + 1, TC).
    """
    m = y.shape[1]
    n_out = m - window + 1
    if window == 1:
        return y
    pow_sums = {1: y}
    w = 1
    while 2 * w <= window:
        s_w = pow_sums[w]
        cur = s_w.shape[1]
        pow_sums[2 * w] = s_w[:, : cur - w, :] + s_w[:, w:cur, :]
        w *= 2
    result = None
    offset = 0
    bit = w
    remaining = window
    while remaining > 0:
        if bit <= remaining:
            piece = pow_sums[bit][:, offset: offset + n_out, :]
            result = piece if result is None else result + piece
            offset += bit
            remaining -= bit
        bit //= 2
    return result


def _avgpool_s1_kernel(x_ref, o_ref, *, K, pad, L, TB, TC):
    """stride == 1: x_ref (TB, L, TC) -> o_ref (TB, L_out, TC), single store."""
    xf = x_ref[...]
    if xf.dtype != jnp.float32:
        xf = xf.astype(jnp.float32)
    if pad > 0:
        left = jnp.broadcast_to(xf[:, 0:1, :], (TB, pad, TC))
        right = jnp.broadcast_to(xf[:, L - 1:L, :], (TB, pad, TC))
        xp = jnp.concatenate([left, xf, right], axis=1)
    else:
        xp = xf
    acc = _sliding_window_sum_axis1(xp, K)          # (TB, L_out, TC)
    o_ref[...] = (acc * (1.0 / K)).astype(o_ref.dtype)


def _avgpool_matmul_kernel(x_ref, o_ref, *, K, stride, pad, L, L_out, TB):
    """stride > 1: out[t] = sum_j A[t, j] * x[j], with
    A[t, j] = (# window offsets whose clamped index == j) / K.  Pure MXU work,
    no strided ref reads, no strided value slices, no padded copy."""
    t_idx = lax.broadcasted_iota(jnp.int32, (L_out, L), 0)
    j_idx = lax.broadcasted_iota(jnp.int32, (L_out, L), 1)
    lo = t_idx * stride - pad
    hi = lo + (K - 1)
    lower = jnp.where(j_idx == 0, -(1 << 30), j_idx)          # clamp-left preimage
    upper = jnp.where(j_idx == L - 1, (1 << 30), j_idx)       # clamp-right preimage
    cnt = jnp.clip(jnp.minimum(hi, upper) - jnp.maximum(lo, lower) + 1, 0, K)
    A = cnt.astype(jnp.float32) * (1.0 / K)                   # (L_out, L)
    for b in range(TB):                                       # static, TB is small
        xb = x_ref[b]                                          # (L, TC)
        if xb.dtype != jnp.float32:
            xb = xb.astype(jnp.float32)
        o_ref[b] = jnp.dot(A, xb, preferred_element_type=jnp.float32).astype(o_ref.dtype)


def _vmem_params():
    """(per-step tile budget, vmem_limit_bytes), generation-aware."""
    cap = None
    try:
        cap = int(pltpu.get_tpu_info().vmem_capacity_bytes)
    except Exception:
        cap = None
    if cap is not None and cap >= 96 * 1024 * 1024:
        # v5e / v6e: 128 MiB VMEM per TensorCore -> bigger tiles, fewer steps.
        return 48 * 1024 * 1024, 96 * 1024 * 1024
    # v7x (64 MiB VMEM) or unknown backend: stay conservative.
    return 24 * 1024 * 1024, 48 * 1024 * 1024


def _choose_tiling(B, L, L_out, C, pad, itemsize, budget):
    """Pick (TB, TC): largest tile fitting the budget, with >= 2 grid steps
    whenever possible so both v7x TensorCores are used."""
    if C % _LANE == 0:
        lane_blocks = C // _LANE
        tc_cands = [_LANE * m for m in range(1, lane_blocks + 1)
                    if lane_blocks % m == 0]
    else:
        tc_cands = [C]          # block dim == full array dim: legal, no pad pass
    tb_cands = [d for d in range(1, B + 1) if B % d == 0]

    def step_bytes(tb, tc):
        in_b = 2 * tb * L * tc * itemsize              # double-buffered input
        out_b = 2 * tb * L_out * tc * itemsize         # double-buffered output
        tmp_b = 6 * tb * (L + 2 * pad) * tc * 4        # f32 padded chunk + sum levels
        return in_b + out_b + tmp_b

    max_steps = B * (C // min(tc_cands))
    want_steps = 2 if max_steps >= 2 else 1

    feasible = [(tb, tc) for tb in tb_cands for tc in tc_cands
                if step_bytes(tb, tc) <= budget]
    if not feasible:
        # TODO(synk): very long L needs an L-tiled variant with a (K-1)-row halo.
        return 1, min(tc_cands)
    preferred = [(tb, tc) for (tb, tc) in feasible
                 if (B // tb) * (C // tc) >= want_steps]
    pool = preferred if preferred else feasible
    return max(pool, key=lambda p: p[0] * p[1])


def avgpool_padding(x, kernel_size, stride):
    """Pallas equivalent of AvgPool_Padding.forward for x of shape (B, L, C)."""
    B, L, C = x.shape
    K, s = int(kernel_size), int(stride)
    pad = (K - 1) // 2
    L_out = (L + 2 * pad - K) // s + 1
    if L_out < 1:
        raise ValueError("kernel_size too large for input length")

    itemsize = x.dtype.itemsize
    budget, vmem_limit = _vmem_params()
    TB, TC = _choose_tiling(B, L, L_out, C, pad, itemsize, budget)
    n_bblocks = B // TB
    n_cblocks = C // TC

    if s == 1:
        kernel = functools.partial(_avgpool_s1_kernel,
                                   K=K, pad=pad, L=L, TB=TB, TC=TC)
        adds = 2 * max(1, math.ceil(math.log2(max(K, 2)))) + 1
        flops = B * L_out * C * adds
    else:
        kernel = functools.partial(_avgpool_matmul_kernel,
                                   K=K, stride=s, pad=pad, L=L, L_out=L_out, TB=TB)
        flops = 2 * B * L_out * L * C

    out = pl.pallas_call(
        kernel,
        out_shape=jax.ShapeDtypeStruct((B, L_out, C), x.dtype),
        grid=(n_bblocks, n_cblocks),
        in_specs=[pl.BlockSpec((TB, L, TC), lambda b, c: (b, 0, c))],
        out_specs=pl.BlockSpec((TB, L_out, TC), lambda b, c: (b, 0, c)),
        compiler_params=pltpu.CompilerParams(
            dimension_semantics=("parallel", "parallel"),
            vmem_limit_bytes=vmem_limit,
        ),
        cost_estimate=pl.CostEstimate(
            flops=int(flops),
            transcendentals=0,
            bytes_accessed=int(B * (L + L_out) * C * itemsize),
        ),
    )(x)
    return out


def _reference(x, kernel_size, stride):
    """Pure-numpy reference mirroring the PyTorch forward (replicate pad + AvgPool1d)."""
    x = np.asarray(x, dtype=np.float64)
    B, L, C = x.shape
    pad = (kernel_size - 1) // 2
    if pad > 0:
        left = np.repeat(x[:, 0:1, :], pad, axis=1)
        right = np.repeat(x[:, -1:, :], pad, axis=1)
        xp = np.concatenate([left, x, right], axis=1)
    else:
        xp = x
    L_pad = xp.shape[1]
    L_out = (L_pad - kernel_size) // stride + 1
    out = np.zeros((B, L_out, C), dtype=np.float64)
    for t in range(L_out):
        out[:, t, :] = xp[:, t * stride:t * stride + kernel_size, :].mean(axis=1)
    return out


if __name__ == "__main__":
    key = jax.random.PRNGKey(0)
    # (B, L, C, kernel_size, stride) — small shapes consistent with the module.
    configs = [
        (2, 8, 32, 5, 1),     # C not 128-aligned -> full-C block, doubling-sum path
        (2, 64, 128, 25, 1),  # large kernel, 128-aligned C -> lane-tiled doubling-sum path
        (2, 16, 32, 4, 2),    # even kernel + stride > 1 -> clamp-count matmul path
    ]
    for (B, L, C, K, s) in configs:
        key, sub = jax.random.split(key)
        x = jax.random.normal(sub, (B, L, C), dtype=jnp.float32)
        out = jax.block_until_ready(avgpool_padding(x, K, s))
        ref = _reference(np.asarray(x), K, s)
        np.testing.assert_allclose(np.asarray(out), ref, rtol=1e-5, atol=1e-5)
    print("KERNEL_OK")
</pallas_src>

<mosaic_0001>
module attributes {stable_mosaic.version = 11 : i64} {
  func.func @_avgpool_s1_kernel(%arg0: i32, %arg1: i32, %arg2: memref<1x8x32xf32, #tpu.memory_space<vmem>>, %arg3: memref<1x8x32xf32, #tpu.memory_space<vmem>>) attributes {dimension_semantics = [#tpu.dimension_semantics<parallel>, #tpu.dimension_semantics<parallel>], iteration_bounds = array<i64: 2, 1>, scalar_prefetch = 0 : i64, scratch_operands = 0 : i64, tpu.core_type = #tpu.core_type<tc>, window_params = [{transform_indices = @transform_0, window_bounds = array<i64: 1, 8, 32>}, {transform_indices = @transform_1, window_bounds = array<i64: 1, 8, 32>}]} {
    %c0 = arith.constant 0 : index
    %c0_0 = arith.constant 0 : index
    %c0_1 = arith.constant 0 : index
    %0 = vector.load %arg2[%c0, %c0_0, %c0_1] : memref<1x8x32xf32, #tpu.memory_space<vmem>>, vector<1x8x32xf32>
    %1 = vector.extract_strided_slice %0 {offsets = [0, 0, 0], sizes = [1, 1, 32], strides = [1, 1, 1]} : vector<1x8x32xf32> to vector<1x1x32xf32>
    %2 = vector.shape_cast %1 : vector<1x1x32xf32> to vector<1x1x32xf32>
    %3 = vector.broadcast %2 : vector<1x1x32xf32> to vector<1x2x32xf32>
    %4 = vector.extract_strided_slice %0 {offsets = [0, 7, 0], sizes = [1, 1, 32], strides = [1, 1, 1]} : vector<1x8x32xf32> to vector<1x1x32xf32>
    %5 = vector.shape_cast %4 : vector<1x1x32xf32> to vector<1x1x32xf32>
    %6 = vector.broadcast %5 : vector<1x1x32xf32> to vector<1x2x32xf32>
    %7 = tpu.concatenate %3, %0, %6 in 1 : vector<1x2x32xf32>, vector<1x8x32xf32>, vector<1x2x32xf32> -> vector<1x12x32xf32>
    %8 = vector.extract_strided_slice %7 {offsets = [0, 0, 0], sizes = [1, 11, 32], strides = [1, 1, 1]} : vector<1x12x32xf32> to vector<1x11x32xf32>
    %9 = vector.extract_strided_slice %7 {offsets = [0, 1, 0], sizes = [1, 11, 32], strides = [1, 1, 1]} : vector<1x12x32xf32> to vector<1x11x32xf32>
    %10 = arith.addf %8, %9 : vector<1x11x32xf32>
    %11 = vector.extract_strided_slice %10 {offsets = [0, 0, 0], sizes = [1, 9, 32], strides = [1, 1, 1]} : vector<1x11x32xf32> to vector<1x9x32xf32>
    %12 = vector.extract_strided_slice %10 {offsets = [0, 2, 0], sizes = [1, 9, 32], strides = [1, 1, 1]} : vector<1x11x32xf32> to vector<1x9x32xf32>
    %13 = arith.addf %11, %12 : vector<1x9x32xf32>
    %14 = vector.extract_strided_slice %13 {offsets = [0, 0, 0], sizes = [1, 8, 32], strides = [1, 1, 1]} : vector<1x9x32xf32> to vector<1x8x32xf32>
    %15 = vector.extract_strided_slice %7 {offsets = [0, 4, 0], sizes = [1, 8, 32], strides = [1, 1, 1]} : vector<1x12x32xf32> to vector<1x8x32xf32>
    %16 = arith.addf %14, %15 : vector<1x8x32xf32>
    %cst = arith.constant 2.000000e-01 : f32
    %17 = vector.broadcast %cst : f32 to vector<1x8x32xf32>
    %18 = arith.mulf %16, %17 : vector<1x8x32xf32>
    %c0_2 = arith.constant 0 : index
    %c0_3 = arith.constant 0 : index
    %c0_4 = arith.constant 0 : index
    %19 = vector.load %arg3[%c0_2, %c0_3, %c0_4] : memref<1x8x32xf32, #tpu.memory_space<vmem>>, vector<1x8x32xf32>
    tpu.vector_store %arg3[%c0_2, %c0_3, %c0_4], %18 {strides = array<i32>} : memref<1x8x32xf32, #tpu.memory_space<vmem>>, vector<1x8x32xf32>,
    return
  }
  func.func @transform_0(%arg0: i32, %arg1: i32) -> (i32, i32, i32) {
    %c0_i32 = arith.constant 0 : i32
    %c0_i32_0 = arith.constant 0 : i32
    return %arg0, %c0_i32, %arg1 : i32, i32, i32
  }
  func.func @transform_1(%arg0: i32, %arg1: i32) -> (i32, i32, i32) {
    %c0_i32 = arith.constant 0 : i32
    %c0_i32_0 = arith.constant 0 : i32
    return %arg0, %c0_i32, %arg1 : i32, i32, i32
  }
}

</mosaic_0001>

<bundles_post_ra>
// kernel: tpu_custom_call.1
= control target key start
LH: loop header
LB: loop body
LE: loop exit
PB: predicated region body
PF: predicated region fallthrough
CT: control target
= control target key end

     0   :  { %6 = vsyncpa [#allocation3], 0  ;;  %s621_s0 = inlined_call_operand.hbm [shape: f32[2,8,32], index: 0, kind: input, shape index: {}]   ;;  %s622_s1 = inlined_call_operand.hbm [shape: f32[2,8,32], index: 1, kind: output, shape index: {}]  }
   0x1   :  { %8 = vsyncpa [#allocation3 + $0x1], 0 }
   0x2   :  { %9 = vsyncpa [#allocation4], 0 }
   0x3   :  { %11 = vsyncpa [#allocation4 + $0x1], 0  ;;  %s483_s6 = smov 0   ;;  %s485_s7 = smov 0  }
   0x4   :  { %s487_s8 = smov 0   ;;  %s489_s9 = smov 0  }
   0x5   :  { %s491_s10 = smov 0   ;;  %s493_s11 = smov 0  }
   0x6 LB: > { %s286_s12 = sadd.s32 4294967295, %s469_s11   ;;  %s287_s13 = sadd.s32 4294967294, %s469_s11   ;;  %s469_s11 = sphi %s493_s11, %s17_s11   ;;  %s465_s10 = sphi %s491_s10, %s634_s10   ;;  %s461_s9 = sphi %s489_s9, %s633_s9   ;;  %s457_s8 = sphi %s487_s8, %s632_s8   ;;  %s453_s7 = sphi %s485_s7, %s631_s7   ;;  %s449_s6 = sphi %s483_s6, %s630_s6  }
   0x7   : > { %s29_s14 = sadd.s32 1, %s465_s10  ;;  %s38_s15 = sadd.s32 1, %s457_s8 }
   0x8   : > { %p31_p0 = scmp.ge.s32.totalorder %s29_s14, 2  ;;  %p45_p1 = scmp.ne.s32.totalorder %s457_s8, %s453_s7 }
   0x9   : > { %p46_p2 = scmp.eq.s32.totalorder %s469_s11, 0  ;;  %p51_p3 = scmp.ne.s32.totalorder %s453_s7, %s449_s6 }
   0xa   : > { %s636_s14 = smov (%p31_p0, %s29_s14), 0  ;;  %p52_p5 = scmp.eq.s32.totalorder %s286_s12, 0 }
   0xb   : > { %p524_p4 = por %p46_p2, %p45_p1  ;;  %s33_s17 = ssub.s32 %s465_s10, %s636_s14 }
   0xc   : > { %p77_p6 = scmp.eq.s32.totalorder %s286_s12, 1  ;;  %p36_p7 = scmp.eq.s32.totalorder %s33_s17, 0 }
   0xd   : > { %p530_p8 = por %p52_p5, %p51_p3  ;;  %p83_p10 = scmp.eq.s32.totalorder %s287_s13, 1 }
   0xe   : > { %p534_p9 = por %p77_p6, %p45_p1  ;;  %p311_p13 = scmp.lt.s32.totalorder %s469_s11, 2 }
   0xf   : > { %s539_s20 = scalar_select %p36_p7, %s457_s8, %s38_s15  }
  0x10   : > { %p541_p11 = por %p83_p10, %p51_p3  ;;  %s103_s22 = sand.u32 1, %s457_s8  }
  0x11   : > { %s290_s23 = sshll.u32 %s103_s22, 3  ;;  %s291_s24 = sshll.u32 %s465_s10, 7 }
  0x12   : > { %s626_s21 = scalar_select %p541_p11, 1, 0 }
  0x13   : > { %s113_s27 = scalar_lea.hbm %s621_s0, %s291_s24  ;;  %s107_s28 = scalar_lea.vmem [#allocation2], %s290_s23 }
  0x14   : > { %s115_s29 = sshll.u32 %s107_s28, 4  ;;  %p554_p0 = pnand %p311_p13, %p524_p4  ;;  %s116_s29 = int_to_ptr.vmem [resolvable:$true] %s115_s29 }
  0x15   : > { %p292_p1 = scmp.ge.s32.totalorder %s469_s11, 1  ;;  %p120_p2 = scmp.lt.s32.totalorder %s469_s11, 3 }
  0x16   : > { %s104_s2 = scalar_lea.sflag [#allocation3], %s103_s22  ;;  %p363_p3 = pneg %p554_p0 }
  0x17   : > { %s374_s3 = scalar_lea.vmem %s116_s29, 128  ;;  %s471_s4 = smov [#allocation2]  }
  0x18   : > { %p375_p5 = scmp.ne.s32.totalorder %s116_s29, %s374_s3  ;;  %s379_s5 = sshll.u32 %s471_s4, 4  ;;  %s380_s5 = int_to_ptr.vmem [resolvable:$false] %s379_s5 }
  0x19   : > { %s381_s12 = scalar_lea.vmem %s380_s5, 256  ;;  %p382_p10 = scmp.lt.s32.totalorder %s116_s29, %s380_s5 }
  0x1a   : > { %p377_p6 = pnand %p375_p5, %p363_p3  ;;  %p383_p12 = scmp.lt.s32.totalorder %s381_s12, %s374_s3 }
  0x1c   : > { %p378_p7 = pneg %p377_p6  ;;  %p384_p4 = por %p383_p12, %p382_p10 }
  0x1e   : > { %p385_p13 = pnand %p384_p4, %p378_p7 }
  0x20   : > { %388 = shalt.err (!%p385_p13)
}
  0x21   : > { %306 = dma.hbm_to_vmem [thread:$0]  (!%p554_p0), %s113_s27, 128, %s116_s29, %s104_s2  }
  0x22   : > { %p121_p11 = pnand %p292_p1, %p120_p2 }
  0x23   : > { %s569_s13 = sand.u32 (!%p121_p11), 1, %s453_s7  }
  0x24   : > { %124 = sbr.rel (%p121_p11) target bundleno = 78 (0x4e), region = 24  ;;  %s293_s15 = sshll.u32 (!%p121_p11), %s569_s13, 3 }
  0x25   : > { %s127_s16 = scalar_lea.sflag (!%p121_p11), [#allocation3], %s569_s13  ;;  %s130_s17 = scalar_lea.vmem (!%p121_p11), [#allocation2], %s293_s15 }
  0x29   : > { %440 = dma.done.wait (%p530_p8), %s127_s16, 128  }
  0x2a   : > { %442 = vsyncadd (%p530_p8), %s127_s16, 4294967168  ;;  %v150_v0 = vlaneseq  ;;  %v149_v4 = vld [vmem:[%s130_s17] sm:$0xff]  ;;  %vm161_vm0 = vcmask 1041408   ;;  %vm166_vm1 = vcmask 1046528   ;;  %vm176_vm2 = vcmask 1045504   ;;  %s148_s18 = scalar_lea.vmem [#allocation5], %s293_s15 }
  0x2b   : > { %v159_v7 = vrot.slane %v149_v4, 6  ;;  %vm182_vm3 = vcmask 1043456   ;;  %s206_s22 = sshll.u32 %s148_s18, 4  ;;  %s296_s23 = sshll.u32 %s461_s9, 7  ;;  %vm189_vm4 = vcmask 261120   ;;  %s207_s22 = int_to_ptr.vmem [resolvable:$true] %s206_s22 }
  0x2c   : > { %v151_v1 = vshrl.u32 %v150_v0, 7  ;;  %s204_s26 = scalar_lea.hbm %s622_s1, %s296_s23  ;;  %s192_s27 = scalar_lea.sflag [#allocation4], %s569_s13 }
  0x2d   : > { %s389_s28 = scalar_lea.vmem %s207_s22, 128  ;;  %s472_s29 = smov [#allocation5]  }
  0x2e   : > { %v152_v2 = vsub.s32 0, %v151_v1  ;;  %v156_v3 = vsub.s32 7, %v151_v1  ;;  %p390_p8 = scmp.ne.s32.totalorder %s207_s22, %s389_s28  ;;  %s393_s30 = sshll.u32 %s472_s29, 4  ;;  %s394_s30 = int_to_ptr.vmem [resolvable:$false] %s393_s30 }
  0x2f   : > { %s395_s2 = scalar_lea.vmem %s394_s30, 256  ;;  %p396_p0 = scmp.lt.s32.totalorder %s207_s22, %s394_s30 }
  0x30   : > { %v153_v5 = vrot.slane %v149_v4, %v152_v2  ;;  %v157_v6 = vrot.slane %v149_v4, %v156_v3  ;;  %p391_p11 = pnand %p390_p8, %p534_p9  ;;  %p397_p1 = scmp.lt.s32.totalorder %s395_s2, %s389_s28 }
  0x32   : > { %v162_v8 = vsel %vm161_vm0, %v153_v5, %v159_v7  ;;  %v163_v9 = vsel %vm161_vm0, %v159_v7, %v157_v6  ;;  %p392_p12 = pneg %p391_p11  ;;  %p398_p2 = por %p397_p1, %p396_p0 }
  0x33   : > { %v167_v10 = vrot.slane %v162_v8, 1  ;;  %v168_v11 = vrot.slane %v163_v9, 1  ;;  %v183_v15 = vrot.slane %v162_v8, 4  ;;  %v184_v16 = vrot.slane %v163_v9, 4 }
  0x34   : > { %p399_p3 = pnand %p398_p2, %p392_p12 }
  0x35   : > { %v169_v12 = vsel %vm166_vm1, %v167_v10, %v168_v11  ;;  %v173_v13 = vadd.f32 %v168_v11, %v163_v9  ;;  %v185_v20 = vsel %vm182_vm3, %v183_v15, %v184_v16 }
  0x36   : > { %v172_v14 = vadd.f32 %v169_v12, %v162_v8 }
  0x37   : > { %v178_v17 = vrot.slane %v173_v13, 2 }
  0x38   : > { %v177_v18 = vrot.slane %v172_v14, 2 }
  0x3a   : > { %v179_v19 = vsel %vm176_vm2, %v177_v18, %v178_v17 }
  0x3b   : > { %v181_v21 = vadd.f32 %v179_v19, %v172_v14 }
  0x3d   : > { %v187_v22 = vadd.f32 %v185_v20, %v181_v21 }
  0x3f   : > { %v188_v23 = vmul.f32 0.2, %v187_v22 }
  0x41   : > { %190 = vst.msk [vmem:[%s148_s18] sm:$0xff] %vm189_vm4, %v188_v23 }
  0x42   : > { %402 = shalt.err (!%p399_p3)
}
  0x43   : > { %s403_s9 = scalar_lea.hbm %s204_s26, 128  ;;  %s407_s5 = scalar_lea.hbm %s622_s1, 256 }
  0x44   : > { %p404_p5 = scmp.ne.s32.totalorder %s204_s26, %s403_s9  ;;  %p408_p10 = scmp.lt.s32.totalorder %s204_s26, %s622_s1 }
  0x45   : > { %p409_p4 = scmp.lt.s32.totalorder %s407_s5, %s403_s9 }
  0x46   : > { %p405_p6 = pnand %p404_p5, %p534_p9 }
  0x47   : > { %p410_p13 = por %p409_p4, %p408_p10 }
  0x48   : > { %p406_p7 = pneg %p405_p6 }
  0x4a   : > { %p411_p8 = pnand %p410_p13, %p406_p7 }
  0x4c   : > { %414 = shalt.err (!%p411_p8)
}
  0x4d   : > { %301 = dma.vmem_to_hbm [thread:$0]  (%p534_p9), %s207_s22, 128, %s204_s26, %s192_s27  }
  0x4e PF: > { %s218_s15 = sand.u32 1, %s449_s6   ;;  %p628_p11 = scmp.ne.s32.totalorder %s626_s21, 0 }
  0x4f   : > { %p629_p12 = scmp.ge.s32.totalorder %s469_s11, 2  ;;  %s219_s16 = scalar_lea.sflag [#allocation4], %s218_s15 }
  0x51   : > { %p308_p0 = pnand %p629_p12, %p628_p11 }
  0x53   : > { %p309_p1 = pneg %p308_p0 }
  0x55   : > { %444 = dma.done.wait (%p309_p1), %s219_s16, 128  }
  0x56   : > { %446 = vsyncadd (%p309_p1), %s219_s16, 4294967168  ;;  %s17_s11 = sadd.s32 1, %s469_s11   ;;  %s630_s6 = smov %s453_s7 }
  0x57   : > { %p14_p2 = scmp.ge.s32.totalorder %s17_s11, 4   ;;  %s631_s7 = smov %s457_s8 }
  0x58   : > { %s632_s8 = smov %s539_s20  ;;  %s633_s9 = smov %s465_s10 }
  0x59   : > { %s634_s10 = smov %s636_s14  ;;  %16 = sbr.rel (!%p14_p2) target bundleno = 6 (0x6), region = 69 }
  0x5e   :  { %224 = vsyncpa [#allocation3], 1 }
  0x5f   :  { %226 = vsyncpa [#allocation3 + $0x1], 1 }
  0x60   :  { %227 = vsyncpa [#allocation4], 1 }
  0x61   :  { %229 = vsyncpa [#allocation4 + $0x1], 1 }

</bundles_post_ra>
